<compile_context>
chip_gen: v6e
topology: v6e:2x2x1
jax: 0.10.0
libtpu: 0.0.40
codegen_flags: <defaults>
</compile_context>

<pallas_src>
import jax
import jax.numpy as jnp
from jax.experimental import pallas as pl
from jax.experimental.pallas import tpu as pltpu

_LANE = 128
_MAX_TILE_ROWS = 2048
_VMEM_BUDGET = 12 * 1024 * 1024   # target for double-buffered inputs + temps
_VMEM_LIMIT = 32 * 1024 * 1024    # safe scoped-VMEM limit on v5e/v6e/v7x


def _fast_recip(x):
    """EUP approx reciprocal + one Newton-Raphson step (~f32 accurate)."""
    r = pl.reciprocal(x, approx=True)
    return r * (2.0 - x * r)


def _make_dice_kernel(C, tr, hw, needs_mask):
    def kernel(pred_ref, true_ref, out_ref):
        # pred_ref: (1, C, tr, 128); true_ref: (1, 1, tr, 128)
        # out_ref : (1, 1, 3, 128) per-block partial sums (inter, sum_p, sum_t)
        tgt = true_ref[0, 0].astype(jnp.float32)                 # (tr, 128)

        if C == 2:
            # softmax(logits)[1] == sigmoid(l1 - l0); stable, 1 exp + 1 recip.
            d = (pred_ref[0, 1].astype(jnp.float32)
                 - pred_ref[0, 0].astype(jnp.float32))
            z = jnp.exp(-jnp.abs(d))
            r = _fast_recip(1.0 + z)
            p1 = jnp.where(d >= 0, r, z * r)
        else:
            # Streaming softmax over channels: running max then running denom,
            # so live intermediates stay ~4 (tr, 128) slabs independent of C
            # (no (C, tr, 128) exp temporary to spill / eat the VMEM budget).
            m = pred_ref[0, 0].astype(jnp.float32)
            for c in range(1, C):
                m = jnp.maximum(m, pred_ref[0, c].astype(jnp.float32))
            denom = jnp.exp(pred_ref[0, 0].astype(jnp.float32) - m)
            p1_num = jnp.exp(pred_ref[0, 1].astype(jnp.float32) - m)
            denom = denom + p1_num
            for c in range(2, C):
                denom = denom + jnp.exp(pred_ref[0, c].astype(jnp.float32) - m)
            p1 = p1_num * _fast_recip(denom)

        if needs_mask:
            # Zero lane-padded positions and any garbage read by the ragged
            # last tile so they cannot bias sum_pred / intersection.
            t_idx = pl.program_id(1)
            row_ids = jax.lax.broadcasted_iota(jnp.int32, (tr, _LANE), 0)
            lane_ids = jax.lax.broadcasted_iota(jnp.int32, (tr, _LANE), 1)
            gidx = (t_idx * tr + row_ids) * _LANE + lane_ids
            valid = gidx < hw
            p1 = jnp.where(valid, p1, 0.0)
            tgt = jnp.where(valid, tgt, 0.0)

        # Direct row stores: no concatenate (XLU shuffle) in the epilogue.
        out_ref[0, 0, 0:1, :] = jnp.sum(p1 * tgt, axis=0, keepdims=True)
        out_ref[0, 0, 1:2, :] = jnp.sum(p1, axis=0, keepdims=True)
        out_ref[0, 0, 2:3, :] = jnp.sum(tgt, axis=0, keepdims=True)

    return kernel


def _select_tile(rows, C, pred_itemsize, true_itemsize, batch):
    """Rows-per-tile: large enough to amortize per-grid-step overhead, small
    enough that double-buffered inputs + f32 temporaries fit scoped VMEM on
    every generation (v7x: 64 MiB physical / 32 MiB scoped default)."""
    per_row = (2 * (C * pred_itemsize + true_itemsize) + 6 * 4) * _LANE
    tr_cap = max(8, min(_MAX_TILE_ROWS, (_VMEM_BUDGET // per_row) // 8 * 8))
    if rows <= tr_cap:
        tr = rows
        # v7x has 2 TensorCores: with batch == 1, force >= 2 grid steps when
        # there is enough spatial work to split, so both cores stay busy.
        if batch == 1 and rows >= 16:
            tr = max(8, ((pl.cdiv(rows, 2) + 7) // 8) * 8)
    else:
        tr = tr_cap
    n_tiles = pl.cdiv(rows, tr)
    return tr, n_tiles


def dice_loss(y_pred, y_true, smooth=1e-6):
    """y_pred: (B, C, H, W) logits (any float dtype); y_true: (B, H, W) mask."""
    B, C, H, W = y_pred.shape
    assert C >= 2, "DiceLoss uses softmax channel 1 -> need C >= 2"
    HW = H * W
    rows = pl.cdiv(HW, _LANE)

    tr, n_tiles = _select_tile(
        rows, C,
        jnp.dtype(y_pred.dtype).itemsize,
        jnp.dtype(y_true.dtype).itemsize,
        B)
    rows_pad = tr * n_tiles
    needs_mask = rows_pad * _LANE != HW

    # Contiguous re-layout only (free reshape, no dtype casts). Only pay the
    # jnp.pad HBM copy when HW is not lane-aligned; row-direction overhang of
    # the last grid tile is handled by the in-kernel mask instead of padding.
    pred = y_pred.reshape(B, C, HW)
    true = y_true.reshape(B, 1, HW)
    if HW % _LANE != 0:
        pad = rows * _LANE - HW
        pred = jnp.pad(pred, ((0, 0), (0, 0), (0, pad)))
        true = jnp.pad(true, ((0, 0), (0, 0), (0, pad)))
    pred = pred.reshape(B, C, rows, _LANE)
    true = true.reshape(B, 1, rows, _LANE)

    kernel = _make_dice_kernel(C, tr, HW, needs_mask)

    partials = pl.pallas_call(
        kernel,
        out_shape=jax.ShapeDtypeStruct((B, n_tiles, 3, _LANE), jnp.float32),
        grid_spec=pltpu.PrefetchScalarGridSpec(
            num_scalar_prefetch=0,
            grid=(B, n_tiles),
            in_specs=[
                pl.BlockSpec((1, C, tr, _LANE), lambda b, t: (b, 0, t, 0)),
                pl.BlockSpec((1, 1, tr, _LANE), lambda b, t: (b, 0, t, 0)),
            ],
            out_specs=pl.BlockSpec((1, 1, 3, _LANE), lambda b, t: (b, t, 0, 0)),
        ),
        compiler_params=pltpu.CompilerParams(
            dimension_semantics=("parallel", "parallel"),
            vmem_limit_bytes=_VMEM_LIMIT),
    )(pred, true)

    sums = jnp.sum(partials, axis=(0, 1, 3))     # (3,) cross-lane reduce, once
    intersection, pred_sum, true_sum = sums[0], sums[1], sums[2]
    dice = (2.0 * intersection + smooth) / (pred_sum + true_sum + smooth)
    return 1.0 - dice


def _dice_loss_ref(y_pred, y_true, smooth=1e-6):
    p = jax.nn.softmax(y_pred.astype(jnp.float32), axis=1)[:, 1, ...].reshape(-1)
    t = y_true.reshape(-1).astype(jnp.float32)
    intersection = jnp.sum(p * t)
    union = jnp.sum(p) + jnp.sum(t)
    return 1.0 - (2.0 * intersection + smooth) / (union + smooth)


if __name__ == "__main__":
    key = jax.random.PRNGKey(0)
    k1, k2, k3, k4, k5, k6 = jax.random.split(key, 6)

    # Case 1: C = 4 -> streaming softmax path, HW multiple of 128 (no pad/mask).
    B, C, H, W = 2, 4, 16, 16
    y_pred = jax.random.normal(k1, (B, C, H, W), dtype=jnp.float32)
    y_true = (jax.random.uniform(k2, (B, H, W)) > 0.5).astype(jnp.int32)
    loss = jax.block_until_ready(dice_loss(y_pred, y_true))
    ref = _dice_loss_ref(y_pred, y_true)
    assert jnp.allclose(loss, ref, atol=1e-5, rtol=1e-5), (loss, ref)

    # Case 2: C = 2 -> sigmoid fast path, HW not lane-aligned (pad + mask).
    B2, C2, H2, W2 = 2, 2, 12, 10
    y_pred2 = jax.random.normal(k3, (B2, C2, H2, W2), dtype=jnp.float32)
    y_true2 = (jax.random.uniform(k4, (B2, H2, W2)) > 0.5).astype(jnp.int32)
    loss2 = jax.block_until_ready(dice_loss(y_pred2, y_true2))
    ref2 = _dice_loss_ref(y_pred2, y_true2)
    assert jnp.allclose(loss2, ref2, atol=1e-5, rtol=1e-5), (loss2, ref2)

    # Case 3: B = 1 -> spatial axis force-split into >= 2 tiles (2-TC path),
    # multi-tile grid with no pad and no mask.
    B3, C3, H3, W3 = 1, 3, 64, 64
    y_pred3 = jax.random.normal(k5, (B3, C3, H3, W3), dtype=jnp.float32)
    y_true3 = (jax.random.uniform(k6, (B3, H3, W3)) > 0.5).astype(jnp.int32)
    loss3 = jax.block_until_ready(dice_loss(y_pred3, y_true3))
    ref3 = _dice_loss_ref(y_pred3, y_true3)
    assert jnp.allclose(loss3, ref3, atol=1e-5, rtol=1e-5), (loss3, ref3)

    print("KERNEL_OK")
</pallas_src>

<mosaic_0001>
module attributes {stable_mosaic.version = 11 : i64} {
  func.func @kernel(%arg0: i32, %arg1: i32, %arg2: memref<1x4x2x128xf32, #tpu.memory_space<vmem>>, %arg3: memref<1x1x2x128xi32, #tpu.memory_space<vmem>>, %arg4: memref<1x1x3x128xf32, #tpu.memory_space<vmem>>) attributes {dimension_semantics = [#tpu.dimension_semantics<parallel>, #tpu.dimension_semantics<parallel>], iteration_bounds = array<i64: 2, 1>, scalar_prefetch = 0 : i64, scratch_operands = 0 : i64, tpu.core_type = #tpu.core_type<tc>, window_params = [{transform_indices = @transform_0, window_bounds = array<i64: 1, 4, 2, 128>}, {transform_indices = @transform_1, window_bounds = array<i64: 1, 1, 2, 128>}, {transform_indices = @transform_2, window_bounds = array<i64: 1, 1, 3, 128>}]} {
    %c0 = arith.constant 0 : index
    %c0_0 = arith.constant 0 : index
    %c0_1 = arith.constant 0 : index
    %c0_2 = arith.constant 0 : index
    %0 = vector.load %arg3[%c0, %c0_0, %c0_1, %c0_2] : memref<1x1x2x128xi32, #tpu.memory_space<vmem>>, vector<1x1x2x128xi32>
    %1 = vector.shape_cast %0 : vector<1x1x2x128xi32> to vector<2x128xi32>
    %2 = arith.sitofp %1 : vector<2x128xi32> to vector<2x128xf32>
    %c0_3 = arith.constant 0 : index
    %c0_4 = arith.constant 0 : index
    %c0_5 = arith.constant 0 : index
    %c0_6 = arith.constant 0 : index
    %3 = vector.load %arg2[%c0_3, %c0_4, %c0_5, %c0_6] : memref<1x4x2x128xf32, #tpu.memory_space<vmem>>, vector<1x1x2x128xf32>
    %4 = vector.shape_cast %3 : vector<1x1x2x128xf32> to vector<2x128xf32>
    %c0_7 = arith.constant 0 : index
    %c1 = arith.constant 1 : index
    %c0_8 = arith.constant 0 : index
    %c0_9 = arith.constant 0 : index
    %5 = vector.load %arg2[%c0_7, %c1, %c0_8, %c0_9] : memref<1x4x2x128xf32, #tpu.memory_space<vmem>>, vector<1x1x2x128xf32>
    %6 = vector.shape_cast %5 : vector<1x1x2x128xf32> to vector<2x128xf32>
    %7 = arith.maximumf %4, %6 : vector<2x128xf32>
    %c0_10 = arith.constant 0 : index
    %c2 = arith.constant 2 : index
    %c0_11 = arith.constant 0 : index
    %c0_12 = arith.constant 0 : index
    %8 = vector.load %arg2[%c0_10, %c2, %c0_11, %c0_12] : memref<1x4x2x128xf32, #tpu.memory_space<vmem>>, vector<1x1x2x128xf32>
    %9 = vector.shape_cast %8 : vector<1x1x2x128xf32> to vector<2x128xf32>
    %10 = arith.maximumf %7, %9 : vector<2x128xf32>
    %c0_13 = arith.constant 0 : index
    %c3 = arith.constant 3 : index
    %c0_14 = arith.constant 0 : index
    %c0_15 = arith.constant 0 : index
    %11 = vector.load %arg2[%c0_13, %c3, %c0_14, %c0_15] : memref<1x4x2x128xf32, #tpu.memory_space<vmem>>, vector<1x1x2x128xf32>
    %12 = vector.shape_cast %11 : vector<1x1x2x128xf32> to vector<2x128xf32>
    %13 = arith.maximumf %10, %12 : vector<2x128xf32>
    %c0_16 = arith.constant 0 : index
    %c0_17 = arith.constant 0 : index
    %c0_18 = arith.constant 0 : index
    %c0_19 = arith.constant 0 : index
    %14 = vector.load %arg2[%c0_16, %c0_17, %c0_18, %c0_19] : memref<1x4x2x128xf32, #tpu.memory_space<vmem>>, vector<1x1x2x128xf32>
    %15 = vector.shape_cast %14 : vector<1x1x2x128xf32> to vector<2x128xf32>
    %16 = arith.subf %15, %13 : vector<2x128xf32>
    %17 = math.exp %16 : vector<2x128xf32>
    %c0_20 = arith.constant 0 : index
    %c1_21 = arith.constant 1 : index
    %c0_22 = arith.constant 0 : index
    %c0_23 = arith.constant 0 : index
    %18 = vector.load %arg2[%c0_20, %c1_21, %c0_22, %c0_23] : memref<1x4x2x128xf32, #tpu.memory_space<vmem>>, vector<1x1x2x128xf32>
    %19 = vector.shape_cast %18 : vector<1x1x2x128xf32> to vector<2x128xf32>
    %20 = arith.subf %19, %13 : vector<2x128xf32>
    %21 = math.exp %20 : vector<2x128xf32>
    %22 = arith.addf %17, %21 : vector<2x128xf32>
    %c0_24 = arith.constant 0 : index
    %c2_25 = arith.constant 2 : index
    %c0_26 = arith.constant 0 : index
    %c0_27 = arith.constant 0 : index
    %23 = vector.load %arg2[%c0_24, %c2_25, %c0_26, %c0_27] : memref<1x4x2x128xf32, #tpu.memory_space<vmem>>, vector<1x1x2x128xf32>
    %24 = vector.shape_cast %23 : vector<1x1x2x128xf32> to vector<2x128xf32>
    %25 = arith.subf %24, %13 : vector<2x128xf32>
    %26 = math.exp %25 : vector<2x128xf32>
    %27 = arith.addf %22, %26 : vector<2x128xf32>
    %c0_28 = arith.constant 0 : index
    %c3_29 = arith.constant 3 : index
    %c0_30 = arith.constant 0 : index
    %c0_31 = arith.constant 0 : index
    %28 = vector.load %arg2[%c0_28, %c3_29, %c0_30, %c0_31] : memref<1x4x2x128xf32, #tpu.memory_space<vmem>>, vector<1x1x2x128xf32>
    %29 = vector.shape_cast %28 : vector<1x1x2x128xf32> to vector<2x128xf32>
    %30 = arith.subf %29, %13 : vector<2x128xf32>
    %31 = math.exp %30 : vector<2x128xf32>
    %32 = arith.addf %27, %31 : vector<2x128xf32>
    %33 = tpu.reciprocal %32 {approx = true} : vector<2x128xf32> -> vector<2x128xf32>
    %34 = arith.mulf %32, %33 : vector<2x128xf32>
    %cst = arith.constant 2.000000e+00 : f32
    %35 = vector.broadcast %cst : f32 to vector<2x128xf32>
    %36 = arith.subf %35, %34 : vector<2x128xf32>
    %37 = arith.mulf %33, %36 : vector<2x128xf32>
    %38 = arith.mulf %21, %37 : vector<2x128xf32>
    %39 = arith.mulf %38, %2 : vector<2x128xf32>
    %cst_32 = arith.constant dense<0.000000e+00> : vector<128xf32>
    %40 = vector.multi_reduction <add>, %39, %cst_32 [0] : vector<2x128xf32> to vector<128xf32>
    %41 = vector.shape_cast %40 : vector<128xf32> to vector<1x128xf32>
    %c0_33 = arith.constant 0 : index
    %c0_34 = arith.constant 0 : index
    %c0_35 = arith.constant 0 : index
    %c0_36 = arith.constant 0 : index
    %42 = vector.load %arg4[%c0_33, %c0_34, %c0_35, %c0_36] : memref<1x1x3x128xf32, #tpu.memory_space<vmem>>, vector<1x1x1x128xf32>
    %43 = vector.shape_cast %42 : vector<1x1x1x128xf32> to vector<1x128xf32>
    %44 = vector.shape_cast %41 : vector<1x128xf32> to vector<1x1x1x128xf32>
    tpu.vector_store %arg4[%c0_33, %c0_34, %c0_35, %c0_36], %44 {strides = array<i32>} : memref<1x1x3x128xf32, #tpu.memory_space<vmem>>, vector<1x1x1x128xf32>,
    %cst_37 = arith.constant dense<0.000000e+00> : vector<128xf32>
    %45 = vector.multi_reduction <add>, %38, %cst_37 [0] : vector<2x128xf32> to vector<128xf32>
    %46 = vector.shape_cast %45 : vector<128xf32> to vector<1x128xf32>
    %c0_38 = arith.constant 0 : index
    %c0_39 = arith.constant 0 : index
    %c1_40 = arith.constant 1 : index
    %c0_41 = arith.constant 0 : index
    %47 = vector.load %arg4[%c0_38, %c0_39, %c1_40, %c0_41] : memref<1x1x3x128xf32, #tpu.memory_space<vmem>>, vector<1x1x1x128xf32>
    %48 = vector.shape_cast %47 : vector<1x1x1x128xf32> to vector<1x128xf32>
    %49 = vector.shape_cast %46 : vector<1x128xf32> to vector<1x1x1x128xf32>
    tpu.vector_store %arg4[%c0_38, %c0_39, %c1_40, %c0_41], %49 {strides = array<i32>} : memref<1x1x3x128xf32, #tpu.memory_space<vmem>>, vector<1x1x1x128xf32>,
    %cst_42 = arith.constant dense<0.000000e+00> : vector<128xf32>
    %50 = vector.multi_reduction <add>, %2, %cst_42 [0] : vector<2x128xf32> to vector<128xf32>
    %51 = vector.shape_cast %50 : vector<128xf32> to vector<1x128xf32>
    %c0_43 = arith.constant 0 : index
    %c0_44 = arith.constant 0 : index
    %c2_45 = arith.constant 2 : index
    %c0_46 = arith.constant 0 : index
    %52 = vector.load %arg4[%c0_43, %c0_44, %c2_45, %c0_46] : memref<1x1x3x128xf32, #tpu.memory_space<vmem>>, vector<1x1x1x128xf32>
    %53 = vector.shape_cast %52 : vector<1x1x1x128xf32> to vector<1x128xf32>
    %54 = vector.shape_cast %51 : vector<1x128xf32> to vector<1x1x1x128xf32>
    tpu.vector_store %arg4[%c0_43, %c0_44, %c2_45, %c0_46], %54 {strides = array<i32>} : memref<1x1x3x128xf32, #tpu.memory_space<vmem>>, vector<1x1x1x128xf32>,
    return
  }
  func.func @transform_0(%arg0: i32, %arg1: i32) -> (i32, i32, i32, i32) {
    %c0_i32 = arith.constant 0 : i32
    %c0_i32_0 = arith.constant 0 : i32
    %c0_i32_1 = arith.constant 0 : i32
    return %arg0, %c0_i32, %arg1, %c0_i32_0 : i32, i32, i32, i32
  }
  func.func @transform_1(%arg0: i32, %arg1: i32) -> (i32, i32, i32, i32) {
    %c0_i32 = arith.constant 0 : i32
    %c0_i32_0 = arith.constant 0 : i32
    %c0_i32_1 = arith.constant 0 : i32
    return %arg0, %c0_i32, %arg1, %c0_i32_0 : i32, i32, i32, i32
  }
  func.func @transform_2(%arg0: i32, %arg1: i32) -> (i32, i32, i32, i32) {
    %c0_i32 = arith.constant 0 : i32
    %c0_i32_0 = arith.constant 0 : i32
    %c0_i32_1 = arith.constant 0 : i32
    return %arg0, %arg1, %c0_i32, %c0_i32_0 : i32, i32, i32, i32
  }
}

</mosaic_0001>

<bundles_post_ra>
// kernel: tpu_custom_call.1
= control target key start
LH: loop header
LB: loop body
LE: loop exit
PB: predicated region body
PF: predicated region fallthrough
CT: control target
= control target key end

     0   :  { %7 = vsyncpa [#allocation3], 0  ;;  %s746_s0 = inlined_call_operand.hbm [shape: f32[2,4,2,128], index: 0, kind: input, shape index: {}]   ;;  %s747_s1 = inlined_call_operand.hbm [shape: s32[2,1,2,128], index: 1, kind: input, shape index: {}]   ;;  %s748_s2 = inlined_call_operand.vmem [shape: f32[2,1,3,128], index: 2, kind: output, shape index: {}]  }
   0x1   :  { %9 = vsyncpa [#allocation3 + $0x1], 0 }
   0x2   :  { %10 = vsyncpa [#allocation5], 0 }
   0x3   :  { %12 = vsyncpa [#allocation5 + $0x1], 0  ;;  %s614_s9 = smov 0   ;;  %s616_s10 = smov 0  }
   0x4   :  { %s618_s11 = smov 0   ;;  %s620_s12 = smov 0  }
   0x5   :  { %s622_s13 = smov 0   ;;  %s624_s14 = smov 0  }
   0x6 LB: > { %s392_s15 = sadd.s32 4294967295, %s593_s14   ;;  %s30_s16 = sadd.s32 1, %s589_s13  ;;  %s593_s14 = sphi %s624_s14, %s18_s14   ;;  %s589_s13 = sphi %s622_s13, %s757_s13   ;;  %s585_s12 = sphi %s620_s12, %s756_s12   ;;  %s581_s11 = sphi %s618_s11, %s755_s11   ;;  %s577_s10 = sphi %s616_s10, %s754_s10   ;;  %s573_s9 = sphi %s614_s9, %s753_s9  }
   0x7   : > { %p32_p0 = scmp.ge.s32.totalorder %s30_s16, 2  ;;  %s39_s17 = sadd.s32 1, %s581_s11 }
   0x8   : > { %p46_p1 = scmp.ne.s32.totalorder %s581_s11, %s577_s10  ;;  %p47_p2 = scmp.eq.s32.totalorder %s593_s14, 0 }
   0x9   : > { %s759_s16 = smov (%p32_p0, %s30_s16), 0  ;;  %p52_p4 = scmp.ne.s32.totalorder %s577_s10, %s573_s9 }
   0xa   : > { %p650_p3 = por %p47_p2, %p46_p1  ;;  %s34_s19 = ssub.s32 %s589_s13, %s759_s16 }
   0xb   : > { %p53_p5 = scmp.eq.s32.totalorder %s392_s15, 0  ;;  %p37_p6 = scmp.eq.s32.totalorder %s34_s19, 0 }
   0xc   : > { %p422_p8 = scmp.lt.s32.totalorder %s593_s14, 2  ;;  %s666_s22 = sand.u32 1, %s581_s11  }
   0xd   : > { %p657_p7 = por %p53_p5, %p52_p4  ;;  %s410_s23 = sshll.u32 %s589_s13, 7 }
   0xe   : > { %s663_s21 = scalar_select %p37_p6, %s581_s11, %s39_s17  }
   0xf   : > { %s396_s24 = sshll.u32 %s666_s22, 3  ;;  %s143_s27 = scalar_lea.hbm %s746_s0, %s410_s23 }
  0x10   : > { %s136_s28 = scalar_lea.vmem [#allocation2], %s396_s24  ;;  %p675_p9 = pnand %p422_p8, %p650_p3 }
  0x11   : > { %s144_s29 = sshll.u32 %s136_s28, 4  ;;  %s133_s3 = scalar_lea.sflag [#allocation3], %s666_s22  ;;  %s145_s29 = int_to_ptr.vmem [resolvable:$true] %s144_s29 }
  0x12   : > { %p485_p10 = pneg %p675_p9  ;;  %s496_s4 = scalar_lea.vmem %s145_s29, 128 }
  0x13   : > { %p497_p11 = scmp.ne.s32.totalorder %s145_s29, %s496_s4  ;;  %s595_s5 = smov [#allocation2]  }
  0x14   : > { %s501_s6 = sshll.u32 %s595_s5, 4  ;;  %s502_s6 = int_to_ptr.vmem [resolvable:$false] %s501_s6 }
  0x15   : > { %p499_p12 = pnand %p497_p11, %p485_p10  ;;  %s503_s7 = scalar_lea.vmem %s502_s6, 256 }
  0x16   : > { %p504_p0 = scmp.lt.s32.totalorder %s145_s29, %s502_s6  ;;  %p505_p1 = scmp.lt.s32.totalorder %s503_s7, %s496_s4 }
  0x17   : > { %p500_p13 = pneg %p499_p12 }
  0x18   : > { %p506_p2 = por %p505_p1, %p504_p0 }
  0x1a   : > { %p507_p3 = pnand %p506_p2, %p500_p13 }
  0x1c   : > { %510 = shalt.err (!%p507_p3)
}
  0x1d   : > { %s596_s8 = smov 32   ;;  %s597_s9 = smov 2  }
  0x1e   : > { %418 = dma.hbm_to_vmem [thread:$0]  (!%p675_p9), %s143_s27, 128, %s145_s29, %s133_s3, %s596_s8, %s596_s8, %s597_s9  }
  0x1f   : > { %p401_p4 = scmp.ge.s32.totalorder %s593_s14, 1  ;;  %p171_p5 = scmp.lt.s32.totalorder %s593_s14, 3 }
  0x20   : > { %s399_s15 = sshll.u32 %s666_s22, 1  ;;  %s400_s18 = sshll.u32 %s589_s13, 5 }
  0x21   : > { %p690_p6 = pnand %p401_p4, %p171_p5  ;;  %s158_s19 = scalar_lea.vmem [#allocation4], %s399_s15 }
  0x22   : > { %s166_s23 = sshll.u32 %s158_s19, 4  ;;  %s164_s26 = scalar_lea.hbm %s747_s1, %s400_s18  ;;  %s167_s23 = int_to_ptr.vmem [resolvable:$true] %s166_s23 }
  0x23   : > { %s155_s28 = scalar_lea.sflag [#allocation5], %s666_s22  ;;  %s524_s4 = scalar_lea.vmem %s167_s23, 32 }
  0x24   : > { %p525_p8 = scmp.ne.s32.totalorder %s167_s23, %s524_s4  ;;  %s598_s27 = smov [#allocation4]  }
  0x25   : > { %s529_s29 = sshll.u32 %s598_s27, 4  ;;  %s530_s29 = int_to_ptr.vmem [resolvable:$false] %s529_s29 }
  0x26   : > { %p527_p11 = pnand %p525_p8, %p485_p10  ;;  %s531_s3 = scalar_lea.vmem %s530_s29, 64 }
  0x27   : > { %p532_p13 = scmp.lt.s32.totalorder %s167_s23, %s530_s29  ;;  %p533_p0 = scmp.lt.s32.totalorder %s531_s3, %s524_s4 }
  0x28   : > { %p528_p12 = pneg %p527_p11 }
  0x29   : > { %p534_p1 = por %p533_p0, %p532_p13 }
  0x2b   : > { %p535_p2 = pnand %p534_p1, %p528_p12 }
  0x2d   : > { %538 = shalt.err (!%p535_p2)
}
  0x2e   : > { %421 = dma.hbm_to_vmem [thread:$0]  (!%p675_p9), %s164_s26, 32, %s167_s23, %s155_s28  }
  0x2f   : > { %175 = sbr.rel (%p690_p6) target bundleno = 127 (0x7f), region = 28  ;;  %s177_s22 = sand.u32 (!%p690_p6), 1, %s577_s10  }
  0x30   : > { %s402_s5 = sshll.u32 (!%p690_p6), %s177_s22, 3  ;;  %s178_s6 = scalar_lea.sflag (!%p690_p6), [#allocation3], %s177_s22 }
  0x31   : > { %s181_s7 = scalar_lea.vmem (!%p690_p6), [#allocation2], %s402_s5 }
  0x34   : > { %564 = dma.done.wait (%p657_p7), %s178_s6, 128  }
  0x35   : > { %566 = vsyncadd (%p657_p7), %s178_s6, 4294967168  ;;  %s403_s8 = sshll.u32 %s177_s22, 1  ;;  %s187_s9 = scalar_lea.sflag [#allocation5], %s177_s22 }
  0x36   : > { %s190_s15 = scalar_lea.vmem [#allocation4], %s403_s8 }
  0x37   : > { %568 = dma.done.wait (%p657_p7), %s187_s9, 32  }
  0x38   : > { %570 = vsyncadd (%p657_p7), %s187_s9, 4294967264  ;;  %vm258_vm0 = vcmask 1041408   ;;  %v225_v0 = vld [vmem:[%s190_s15] sm:$0x3]  ;;  %v227_v1 = vld [vmem:[%s181_s7] sm:$0x3] }
  0x39   : > { %v405_v2 = vld [vmem:[%s181_s7 + $0x2] sm:$0x3]  ;;  %v226_v3 = vcvt.s32.f32 %v225_v0  ;;  %v406_v5 = vld [vmem:[%s181_s7 + $0x4] sm:$0x3]  ;;  %p218_p9 = scmp.lt.s32.totalorder %s585_s12, 1 }
  0x3a   : > { %v230_v4 = vmax.f32 %v227_v1, %v405_v2  ;;  %v407_v6 = vld [vmem:[%s181_s7 + $0x6] sm:$0x3] }
  0x3b   : > { %v275_v8 = vsel %vm258_vm0, %v226_v3, 0.0  ;;  %s761_s12 = smov (!%p218_p9, %s585_s12), 1 }
  0x3c   : > { %v233_v7 = vmax.f32 %v230_v4, %v406_v5  ;;  %v276_v9 = vrot.slane %v275_v8, 4  ;;  %s404_s20 = sshll.u32 %s761_s12, 2 }
  0x3d   : > { %s721_s18 = scalar_lea.vmem %s748_s2, %s404_s20 }
  0x3e   : > { %v236_v10 = vmax.f32 %v233_v7, %v407_v6  ;;  %v277_v11 = vadd.f32 %v276_v9, %v275_v8 }
  0x40   : > { %v237_v12 = vsub.f32 %v227_v1, %v236_v10  ;;  %v240_v13 = vsub.f32 %v405_v2, %v236_v10  ;;  %v244_v14 = vsub.f32 %v406_v5, %v236_v10  ;;  %v248_v15 = vsub.f32 %v407_v6, %v236_v10 }
  0x41   : > { %v278_v16 = vrot.slane %v277_v11, 2 }
  0x42   : > { %v238_v17 = vmul.f32 1.442695, %v237_v12  ;;  %v241_v18 = vmul.f32 1.442695, %v240_v13  ;;  %v245_v19 = vmul.f32 1.442695, %v244_v14 }
  0x43   : > { %v249_v20 = vmul.f32 1.442695, %v248_v15  ;;  %v279_v21 = vadd.f32 %v278_v16, %v277_v11 }
  0x44   : > { %473 = vpow2.f32 %v238_v17 }
  0x45   : > { %475 = vpow2.f32 %v241_v18  ;;  %v280_v22 = vrot.slane %v279_v21, 1 }
  0x46   : > { %477 = vpow2.f32 %v245_v19 }
  0x47   : > { %479 = vpow2.f32 %v249_v20  ;;  %v281_v23 = vadd.f32 %v280_v22, %v279_v21 }
  0x49   : > { %282 = vst [vmem:[%s721_s18 + $0x2] sm:$0x1] %v281_v23 }
  0x51   : > { %v474_v24 = vpop.eup %473 }
  0x52   : > { %v476_v25 = vpop.eup %475 }
  0x53   : > { %v478_v26 = vpop.eup %477  ;;  %v243_v27 = vadd.f32 %v476_v25, %v474_v24 }
  0x54   : > { %v480_v28 = vpop.eup %479 }
  0x55   : > { %v247_v29 = vadd.f32 %v478_v26, %v243_v27 }
  0x57   : > { %v251_v30 = vadd.f32 %v480_v28, %v247_v29 }
  0x59   : > { %481 = vrcp.f32 %v251_v30 }
  0x66   : > { %v482_v31 = vpop.eup %481 }
  0x67   : > { %v253_v32 = vmul.f32 %v482_v31, %v251_v30 }
  0x69   : > { %v254_v33 = vsub.f32 2.0, %v253_v32 }
  0x6b   : > { %v255_v34 = vmul.f32 %v482_v31, %v254_v33 }
  0x6d   : > { %v256_v35 = vmul.f32 %v476_v25, %v255_v34 }
  0x6f   : > { %v257_v36 = vmul.f32 %v256_v35, %v226_v3  ;;  %v267_v37 = vsel %vm258_vm0, %v256_v35, 0.0 }
  0x70   : > { %v268_v38 = vrot.slane %v267_v37, 4 }
  0x71   : > { %v259_v39 = vsel %vm258_vm0, %v257_v36, 0.0 }
  0x72   : > { %v260_v40 = vrot.slane %v259_v39, 4  ;;  %v269_v41 = vadd.f32 %v268_v38, %v267_v37 }
  0x74   : > { %v261_v42 = vadd.f32 %v260_v40, %v259_v39  ;;  %v270_v43 = vrot.slane %v269_v41, 2 }
  0x76   : > { %v262_v44 = vrot.slane %v261_v42, 2  ;;  %v271_v45 = vadd.f32 %v270_v43, %v269_v41 }
  0x78   : > { %v263_v46 = vadd.f32 %v262_v44, %v261_v42  ;;  %v272_v47 = vrot.slane %v271_v45, 1 }
  0x7a   : > { %v264_v48 = vrot.slane %v263_v46, 1  ;;  %v273_v49 = vadd.f32 %v272_v47, %v271_v45 }
  0x7c   : > { %v265_v50 = vadd.f32 %v264_v48, %v263_v46  ;;  %274 = vst [vmem:[%s721_s18 + $0x1] sm:$0x1] %v273_v49 }
  0x7e   : > { %266 = vst [vmem:[%s721_s18] sm:$0x1] %v265_v50 }
  0x7f PF: > { %s18_s14 = sadd.s32 1, %s593_s14   ;;  %s753_s9 = smov %s577_s10 }
  0x80   : > { %p15_p7 = scmp.ge.s32.totalorder %s18_s14, 4   ;;  %s754_s10 = smov %s581_s11 }
  0x81   : > { %s755_s11 = smov %s663_s21  ;;  %s756_s12 = smov %s589_s13 }
  0x82   : > { %s757_s13 = smov %s759_s16  ;;  %17 = sbr.rel (!%p15_p7) target bundleno = 6 (0x6), region = 84 }
  0x87   :  { %308 = vsyncpa [#allocation3], 1 }
  0x88   :  { %310 = vsyncpa [#allocation3 + $0x1], 1 }
  0x89   :  { %311 = vsyncpa [#allocation5], 1 }
  0x8a   :  { %313 = vsyncpa [#allocation5 + $0x1], 1 }

</bundles_post_ra>
